<compile_context>
chip_gen: v6e
topology: v6e:2x2x1
jax: 0.10.0
libtpu: 0.0.40
codegen_flags: <defaults>
</compile_context>

<pallas_src>
import functools

import jax
import jax.numpy as jnp
import numpy as np
from jax.experimental import pallas as pl
from jax.experimental.pallas import tpu as pltpu


def _make_deinterleave_matrix(cw: int) -> np.ndarray:
    """(2*cw, 2*cw) 0/1 matrix: [m0,s0,m1,s1,...] @ C -> [m0..m_{cw-1} | s0..s_{cw-1}]."""
    c = np.zeros((2 * cw, 2 * cw), np.float32)
    k = np.arange(cw)
    c[2 * k, k] = 1.0            # even lanes (mu)    -> columns [0, cw)
    c[2 * k + 1, cw + k] = 1.0   # odd  lanes (sigma) -> columns [cw, 2*cw)
    return c


def _tpu_vmem_bytes() -> int:
    """Physical VMEM per core; conservative (v7x-sized) fallback if unavailable."""
    try:
        return int(pltpu.get_tpu_info().vmem_capacity_bytes)
    except Exception:
        return 64 * 1024 * 1024


def _gauss_loss_kernel(params_ref, tgt_ref, cmat_ref, psum_ref, *,
                       batch, n_samples, block_b, block_n, chunk, single_pass):
    i = pl.program_id(0)  # batch-block index
    j = pl.program_id(1)  # sample-block index

    valid_rows = jnp.minimum(batch - i * block_b, block_b)
    valid_cols = jnp.minimum(n_samples - j * block_n, block_n)
    is_interior = (valid_rows >= block_b) & (valid_cols >= block_n)

    cm = cmat_ref[...]                     # (2*chunk, 2*chunk) bf16 0/1 selection matrix
    n_chunks = block_n // chunk            # <= 4 by construction (fully unrolled below)

    def deinterleave(xc):
        """Exact MXU de-interleave -> (block_b, 2*chunk) f32 = [mu | sigma]."""
        if single_pass:
            # bf16 inputs: one DEFAULT-precision bf16 matmul is exact (0/1 matrix).
            return jnp.dot(xc, cm, preferred_element_type=jnp.float32)
        # f32 inputs: exact 3-way bf16 split (hi + mid + lo == xc in f32),
        # three 1-pass bf16 matmuls instead of one 6-pass HIGHEST f32 matmul.
        hi = xc.astype(jnp.bfloat16)
        r1 = xc - hi.astype(jnp.float32)
        mid = r1.astype(jnp.bfloat16)
        lo = (r1 - mid.astype(jnp.float32)).astype(jnp.bfloat16)
        return (jnp.dot(hi, cm, preferred_element_type=jnp.float32)
                + jnp.dot(mid, cm, preferred_element_type=jnp.float32)
                + jnp.dot(lo, cm, preferred_element_type=jnp.float32))

    def chunk_sum(c, acc, masked):
        # Interleaved params / targets for samples [c*chunk, (c+1)*chunk) of this block.
        xc = params_ref[:, c * 2 * chunk:(c + 1) * 2 * chunk]
        tc = tgt_ref[:, c * chunk:(c + 1) * chunk].astype(jnp.float32)
        if not single_pass:
            xc = xc.astype(jnp.float32)

        if masked:
            # Edge block: zero padded/garbage lanes so inf/NaN cannot poison the
            # valid columns of the selection matmul.  cols_left may go <= 0 for
            # fully-padded chunks; the comparisons below handle that.
            cols_left = valid_cols - c * chunk
            lane_ids = jax.lax.broadcasted_iota(jnp.int32, (block_b, 2 * chunk), 1)
            xc = jnp.where(lane_ids < 2 * cols_left, xc, jnp.zeros_like(xc))

        packed = deinterleave(xc)
        mu = packed[:, :chunk]
        sigma = packed[:, chunk:]

        var = sigma * sigma
        diff = tc - mu
        losses = diff * diff / var + jnp.log(var)  # == exp(-log(var))*diff^2 + log(var)

        if masked:
            row_ids = jax.lax.broadcasted_iota(jnp.int32, (block_b, chunk), 0)
            col_ids = jax.lax.broadcasted_iota(jnp.int32, (block_b, chunk), 1)
            keep = (row_ids < valid_rows) & (col_ids < cols_left)
            losses = jnp.where(keep, losses, 0.0)  # true select: kills inf/NaN

        return acc + jnp.sum(losses, axis=0, keepdims=True)

    def block_sum(masked):
        acc = jnp.zeros((1, chunk), jnp.float32)
        for c in range(n_chunks):  # short, fully-unrolled chunk loop (n_chunks <= 4)
            acc = chunk_sum(c, acc, masked)
        return acc.reshape(1, 1, chunk)

    # Hoist edge masking out of the interior-block hot path.
    @pl.when(is_interior)
    def _interior():
        psum_ref[...] = block_sum(masked=False)

    @pl.when(jnp.logical_not(is_interior))
    def _edge():
        psum_ref[...] = block_sum(masked=True)


@jax.jit
def gauss_loss(outputs: jax.Array, targets: jax.Array) -> jax.Array:
    """Pallas implementation of GaussLoss.forward (scalar f32 loss)."""
    n_samples = targets.shape[-1]
    outputs = outputs.reshape(-1, n_samples, 2)
    targets = targets.reshape(-1, n_samples)
    batch = targets.shape[0]
    total = batch * n_samples

    # Keep params in their native dtype, interleaved; casting happens in-kernel.
    params = outputs.reshape(batch, 2 * n_samples)   # free reshape

    p_isz = params.dtype.itemsize
    t_isz = targets.dtype.itemsize
    single_pass = params.dtype == jnp.dtype(jnp.bfloat16)

    # ---- generation-aware VMEM budget --------------------------------------
    vmem_cap = _tpu_vmem_bytes()                       # 128 MiB v5e/v6e, 64 MiB v7x
    vmem_limit = max(32 << 20, min(96 << 20, (vmem_cap * 3) // 4))
    row_cap = 1024 if vmem_limit >= (64 << 20) else 512

    m = max(8, 32 // min(p_isz, t_isz))   # sublane multiple: 8 f32 / 16 bf16 / 32 int8
    bps = 2 * p_isz + t_isz               # HBM bytes per sample
    target_bytes = 6 << 20                # ~4-8 MB of DMA per grid step

    # ---- re-aspect small batches --------------------------------------------
    # The loss is a plain mean and (mu, sigma) stay adjacent under any row
    # regrouping, so folding sample groups into the batch axis is free.  This
    # keeps grid steps large and guarantees >= 2 parallel blocks for v7x's two
    # TensorCores when the sample axis is long but batch is tiny.
    desired_rows = max(2 * m, target_bytes // (bps * 512))
    if batch < desired_rows and n_samples >= 1024:
        for new_n in range(512, min(n_samples // 2, 4096) + 1, 128):
            if n_samples % new_n == 0:
                fold = n_samples // new_n
                batch, n_samples = batch * fold, new_n
                params = params.reshape(batch, 2 * n_samples)    # free reshape
                targets = targets.reshape(batch, n_samples)      # free reshape
                break

    # ---- block sizing --------------------------------------------------------
    # Sample (lane) block: multiple of 128 where possible, capped at 512 so the
    # in-kernel chunk loop stays a <= 4-step unrolled loop.
    if n_samples < 128:
        block_n = n_samples
    else:
        block_n = min(512, (n_samples // 128) * 128)
    chunk = 128 if block_n % 128 == 0 else block_n

    # Batch (sublane) block: sized for ~target_bytes of DMA per grid step,
    # capped by the (generation-aware) VMEM budget.
    if batch <= m:
        block_b = batch
    else:
        want_b = max(m, target_bytes // (bps * block_n))
        block_b = min(batch, want_b, row_cap)
        block_b = max(m, (block_b // m) * m)

    grid_b = pl.cdiv(batch, block_b)
    grid_n = pl.cdiv(n_samples, block_n)

    cmat = jnp.asarray(_make_deinterleave_matrix(chunk), dtype=jnp.bfloat16)

    kernel = functools.partial(
        _gauss_loss_kernel,
        batch=batch, n_samples=n_samples,
        block_b=block_b, block_n=block_n, chunk=chunk, single_pass=single_pass)

    # Each (i, j) block writes its own lane-dense partial-sum slot, so both grid
    # axes are "parallel" (no accumulator axis); the tiny partial sums are
    # reduced in JAX with the true element count.
    partial_sums = pl.pallas_call(
        kernel,
        out_shape=jax.ShapeDtypeStruct((grid_b * grid_n, 1, chunk), jnp.float32),
        grid=(grid_b, grid_n),
        in_specs=[
            pl.BlockSpec((block_b, 2 * block_n), lambda i, j: (i, j)),   # params
            pl.BlockSpec((block_b, block_n), lambda i, j: (i, j)),       # targets
            pl.BlockSpec((2 * chunk, 2 * chunk), lambda i, j: (0, 0)),   # selection matrix
        ],
        out_specs=pl.BlockSpec((1, 1, chunk), lambda i, j: (i * grid_n + j, 0, 0)),
        compiler_params=pltpu.CompilerParams(
            dimension_semantics=("parallel", "parallel"),
            vmem_limit_bytes=vmem_limit),
    )(params, targets, cmat)

    return jnp.sum(partial_sums) / total


def gauss_loss_ref(outputs: jax.Array, targets: jax.Array) -> jax.Array:
    """Pure-JAX reference mirroring the PyTorch module."""
    n_samples = targets.shape[-1]
    outputs = outputs.reshape(-1, n_samples, 2).astype(jnp.float32)
    targets = targets.reshape(-1, n_samples).astype(jnp.float32)
    mus = outputs[:, :, 0]
    sigmas = outputs[:, :, 1]
    s = jnp.log(sigmas ** 2)
    losses = jnp.exp(-s) * (targets - mus) ** 2 + s
    return losses.mean()


if __name__ == "__main__":
    key = jax.random.PRNGKey(0)

    # Small configs covering: single interior (unmasked) block, ragged rows+cols
    # (masked edge blocks on a 2x2 grid), the batch-fold re-aspect path, and the
    # native-bf16 single-pass de-interleave path.
    configs = [
        (2, 128, jnp.float32),
        (10, 520, jnp.float32),
        (4, 1024, jnp.float32),
        (6, 256, jnp.bfloat16),
    ]
    for (batch, samples, dtype) in configs:
        k1, k2, k3, key = jax.random.split(key, 4)
        mus = jax.random.normal(k1, (batch, samples), dtype=jnp.float32)
        # keep sigmas away from 0 so log(sigma^2) is well-behaved
        sigmas = jnp.abs(jax.random.normal(k2, (batch, samples), dtype=jnp.float32)) + 0.5
        targets = jax.random.normal(k3, (batch, samples), dtype=jnp.float32)
        outputs = jnp.stack([mus, sigmas], axis=-1).astype(dtype)   # (batch, samples, 2)
        targets = targets.astype(dtype)

        loss = jax.block_until_ready(gauss_loss(outputs, targets))
        ref = jax.block_until_ready(gauss_loss_ref(outputs, targets))
        assert jnp.allclose(loss, ref, rtol=1e-5, atol=1e-5), (
            batch, samples, dtype, loss, ref)

    print("KERNEL_OK")
</pallas_src>

<mosaic_0001>
module attributes {stable_mosaic.version = 11 : i64} {
  func.func @_gauss_loss_kernel(%arg0: i32, %arg1: i32, %arg2: memref<2x256xf32, #tpu.memory_space<vmem>>, %arg3: memref<2x128xf32, #tpu.memory_space<vmem>>, %arg4: memref<256x256xbf16, #tpu.memory_space<vmem>>, %arg5: memref<1x1x128xf32, #tpu.memory_space<vmem>>) attributes {dimension_semantics = [#tpu.dimension_semantics<parallel>, #tpu.dimension_semantics<parallel>], iteration_bounds = array<i64: 1, 1>, scalar_prefetch = 0 : i64, scratch_operands = 0 : i64, tpu.core_type = #tpu.core_type<tc>, window_params = [{transform_indices = @transform_0, window_bounds = array<i64: 2, 256>}, {transform_indices = @transform_1, window_bounds = array<i64: 2, 128>}, {pipeline_mode = #tpu.pipeline_mode<synchronous>, transform_indices = @transform_2, window_bounds = array<i64: 256, 256>}, {transform_indices = @transform_3, window_bounds = array<i64: 1, 1, 128>}]} {
    %c2_i32 = arith.constant 2 : i32
    %0 = arith.muli %arg0, %c2_i32 : i32
    %c2_i32_0 = arith.constant 2 : i32
    %1 = arith.subi %c2_i32_0, %0 : i32
    %c2_i32_1 = arith.constant 2 : i32
    %2 = arith.minsi %1, %c2_i32_1 : i32
    %c128_i32 = arith.constant 128 : i32
    %3 = arith.muli %arg1, %c128_i32 : i32
    %c128_i32_2 = arith.constant 128 : i32
    %4 = arith.subi %c128_i32_2, %3 : i32
    %c128_i32_3 = arith.constant 128 : i32
    %5 = arith.minsi %4, %c128_i32_3 : i32
    %c2_i32_4 = arith.constant 2 : i32
    %6 = arith.cmpi sge, %2, %c2_i32_4 : i32
    %c128_i32_5 = arith.constant 128 : i32
    %7 = arith.cmpi sge, %5, %c128_i32_5 : i32
    %8 = arith.andi %6, %7 : i1
    %c0 = arith.constant 0 : index
    %c0_6 = arith.constant 0 : index
    %9 = vector.load %arg4[%c0, %c0_6] : memref<256x256xbf16, #tpu.memory_space<vmem>>, vector<256x256xbf16>
    %10 = arith.extui %8 : i1 to i32
    %c0_i32 = arith.constant 0 : i32
    %11 = arith.cmpi ne, %10, %c0_i32 : i32
    scf.if %11 {
      %cst = arith.constant 0.000000e+00 : f32
      %15 = vector.broadcast %cst : f32 to vector<1x128xf32>
      %c0_8 = arith.constant 0 : index
      %c0_9 = arith.constant 0 : index
      %16 = vector.load %arg2[%c0_8, %c0_9] : memref<2x256xf32, #tpu.memory_space<vmem>>, vector<2x256xf32>
      %c0_10 = arith.constant 0 : index
      %c0_11 = arith.constant 0 : index
      %17 = vector.load %arg3[%c0_10, %c0_11] : memref<2x128xf32, #tpu.memory_space<vmem>>, vector<2x128xf32>
      %18 = arith.truncf %16 : vector<2x256xf32> to vector<2x256xbf16>
      %19 = arith.extf %18 : vector<2x256xbf16> to vector<2x256xf32>
      %20 = arith.subf %16, %19 : vector<2x256xf32>
      %21 = arith.truncf %20 : vector<2x256xf32> to vector<2x256xbf16>
      %22 = arith.extf %21 : vector<2x256xbf16> to vector<2x256xf32>
      %23 = arith.subf %20, %22 : vector<2x256xf32>
      %24 = arith.truncf %23 : vector<2x256xf32> to vector<2x256xbf16>
      %cst_12 = arith.constant dense<0.000000e+00> : vector<2x256xf32>
      %25 = tpu.matmul %18, %9, %cst_12 {dimension_numbers = #tpu.dot_dimension_numbers<[1], [0], [0], [1], [0, 0, 1, 1], [], []>} : vector<2x256xbf16>, vector<256x256xbf16>, vector<2x256xf32> -> vector<2x256xf32>
      %cst_13 = arith.constant dense<0.000000e+00> : vector<2x256xf32>
      %26 = tpu.matmul %21, %9, %cst_13 {dimension_numbers = #tpu.dot_dimension_numbers<[1], [0], [0], [1], [0, 0, 1, 1], [], []>} : vector<2x256xbf16>, vector<256x256xbf16>, vector<2x256xf32> -> vector<2x256xf32>
      %27 = arith.addf %25, %26 : vector<2x256xf32>
      %cst_14 = arith.constant dense<0.000000e+00> : vector<2x256xf32>
      %28 = tpu.matmul %24, %9, %cst_14 {dimension_numbers = #tpu.dot_dimension_numbers<[1], [0], [0], [1], [0, 0, 1, 1], [], []>} : vector<2x256xbf16>, vector<256x256xbf16>, vector<2x256xf32> -> vector<2x256xf32>
      %29 = arith.addf %27, %28 : vector<2x256xf32>
      %30 = vector.extract_strided_slice %29 {offsets = [0, 0], sizes = [2, 128], strides = [1, 1]} : vector<2x256xf32> to vector<2x128xf32>
      %31 = vector.extract_strided_slice %29 {offsets = [0, 128], sizes = [2, 128], strides = [1, 1]} : vector<2x256xf32> to vector<2x128xf32>
      %32 = arith.mulf %31, %31 : vector<2x128xf32>
      %33 = arith.subf %17, %30 : vector<2x128xf32>
      %34 = arith.mulf %33, %33 : vector<2x128xf32>
      %35 = arith.divf %34, %32 : vector<2x128xf32>
      %36 = math.log %32 : vector<2x128xf32>
      %37 = arith.addf %35, %36 : vector<2x128xf32>
      %cst_15 = arith.constant dense<0.000000e+00> : vector<128xf32>
      %38 = vector.multi_reduction <add>, %37, %cst_15 [0] : vector<2x128xf32> to vector<128xf32>
      %39 = vector.shape_cast %38 : vector<128xf32> to vector<1x128xf32>
      %40 = arith.addf %15, %39 : vector<1x128xf32>
      %41 = vector.shape_cast %40 : vector<1x128xf32> to vector<1x1x128xf32>
      %c0_16 = arith.constant 0 : index
      %c0_17 = arith.constant 0 : index
      %c0_18 = arith.constant 0 : index
      %42 = vector.load %arg5[%c0_16, %c0_17, %c0_18] : memref<1x1x128xf32, #tpu.memory_space<vmem>>, vector<1x1x128xf32>
      tpu.vector_store %arg5[%c0_16, %c0_17, %c0_18], %41 {strides = array<i32>} : memref<1x1x128xf32, #tpu.memory_space<vmem>>, vector<1x1x128xf32>,
    } else {
    }
    %true = arith.constant true
    %12 = arith.xori %8, %true : i1
    %13 = arith.extui %12 : i1 to i32
    %c0_i32_7 = arith.constant 0 : i32
    %14 = arith.cmpi ne, %13, %c0_i32_7 : i32
    scf.if %14 {
      %cst = arith.constant 0.000000e+00 : f32
      %15 = vector.broadcast %cst : f32 to vector<1x128xf32>
      %c0_8 = arith.constant 0 : index
      %c0_9 = arith.constant 0 : index
      %16 = vector.load %arg2[%c0_8, %c0_9] : memref<2x256xf32, #tpu.memory_space<vmem>>, vector<2x256xf32>
      %c0_10 = arith.constant 0 : index
      %c0_11 = arith.constant 0 : index
      %17 = vector.load %arg3[%c0_10, %c0_11] : memref<2x128xf32, #tpu.memory_space<vmem>>, vector<2x128xf32>
      %c0_i32_12 = arith.constant 0 : i32
      %18 = arith.subi %5, %c0_i32_12 : i32
      %19 = tpu.iota {dimensions = array<i32: 1>} : vector<2x256xi32>
      %c2_i32_13 = arith.constant 2 : i32
      %20 = arith.muli %c2_i32_13, %18 : i32
      %21 = vector.broadcast %20 : i32 to vector<2x256xi32>
      %22 = arith.cmpi slt, %19, %21 : vector<2x256xi32>
      %cst_14 = arith.constant 0.000000e+00 : f32
      %23 = vector.broadcast %cst_14 : f32 to vector<2x256xf32>
      %24 = arith.select %22, %16, %23 : vector<2x256xi1>, vector<2x256xf32>
      %25 = arith.truncf %24 : vector<2x256xf32> to vector<2x256xbf16>
      %26 = arith.extf %25 : vector<2x256xbf16> to vector<2x256xf32>
      %27 = arith.subf %24, %26 : vector<2x256xf32>
      %28 = arith.truncf %27 : vector<2x256xf32> to vector<2x256xbf16>
      %29 = arith.extf %28 : vector<2x256xbf16> to vector<2x256xf32>
      %30 = arith.subf %27, %29 : vector<2x256xf32>
      %31 = arith.truncf %30 : vector<2x256xf32> to vector<2x256xbf16>
      %cst_15 = arith.constant dense<0.000000e+00> : vector<2x256xf32>
      %32 = tpu.matmul %25, %9, %cst_15 {dimension_numbers = #tpu.dot_dimension_numbers<[1], [0], [0], [1], [0, 0, 1, 1], [], []>} : vector<2x256xbf16>, vector<256x256xbf16>, vector<2x256xf32> -> vector<2x256xf32>
      %cst_16 = arith.constant dense<0.000000e+00> : vector<2x256xf32>
      %33 = tpu.matmul %28, %9, %cst_16 {dimension_numbers = #tpu.dot_dimension_numbers<[1], [0], [0], [1], [0, 0, 1, 1], [], []>} : vector<2x256xbf16>, vector<256x256xbf16>, vector<2x256xf32> -> vector<2x256xf32>
      %34 = arith.addf %32, %33 : vector<2x256xf32>
      %cst_17 = arith.constant dense<0.000000e+00> : vector<2x256xf32>
      %35 = tpu.matmul %31, %9, %cst_17 {dimension_numbers = #tpu.dot_dimension_numbers<[1], [0], [0], [1], [0, 0, 1, 1], [], []>} : vector<2x256xbf16>, vector<256x256xbf16>, vector<2x256xf32> -> vector<2x256xf32>
      %36 = arith.addf %34, %35 : vector<2x256xf32>
      %37 = vector.extract_strided_slice %36 {offsets = [0, 0], sizes = [2, 128], strides = [1, 1]} : vector<2x256xf32> to vector<2x128xf32>
      %38 = vector.extract_strided_slice %36 {offsets = [0, 128], sizes = [2, 128], strides = [1, 1]} : vector<2x256xf32> to vector<2x128xf32>
      %39 = arith.mulf %38, %38 : vector<2x128xf32>
      %40 = arith.subf %17, %37 : vector<2x128xf32>
      %41 = arith.mulf %40, %40 : vector<2x128xf32>
      %42 = arith.divf %41, %39 : vector<2x128xf32>
      %43 = math.log %39 : vector<2x128xf32>
      %44 = arith.addf %42, %43 : vector<2x128xf32>
      %45 = tpu.iota {dimensions = array<i32: 0>} : vector<2x128xi32>
      %46 = tpu.iota {dimensions = array<i32: 1>} : vector<2x128xi32>
      %47 = vector.broadcast %2 : i32 to vector<2x128xi32>
      %48 = arith.cmpi slt, %45, %47 : vector<2x128xi32>
      %49 = vector.broadcast %18 : i32 to vector<2x128xi32>
      %50 = arith.cmpi slt, %46, %49 : vector<2x128xi32>
      %51 = arith.andi %48, %50 : vector<2x128xi1>
      %cst_18 = arith.constant 0.000000e+00 : f32
      %52 = vector.broadcast %cst_18 : f32 to vector<2x128xf32>
      %53 = arith.select %51, %44, %52 : vector<2x128xi1>, vector<2x128xf32>
      %cst_19 = arith.constant dense<0.000000e+00> : vector<128xf32>
      %54 = vector.multi_reduction <add>, %53, %cst_19 [0] : vector<2x128xf32> to vector<128xf32>
      %55 = vector.shape_cast %54 : vector<128xf32> to vector<1x128xf32>
      %56 = arith.addf %15, %55 : vector<1x128xf32>
      %57 = vector.shape_cast %56 : vector<1x128xf32> to vector<1x1x128xf32>
      %c0_20 = arith.constant 0 : index
      %c0_21 = arith.constant 0 : index
      %c0_22 = arith.constant 0 : index
      %58 = vector.load %arg5[%c0_20, %c0_21, %c0_22] : memref<1x1x128xf32, #tpu.memory_space<vmem>>, vector<1x1x128xf32>
      tpu.vector_store %arg5[%c0_20, %c0_21, %c0_22], %57 {strides = array<i32>} : memref<1x1x128xf32, #tpu.memory_space<vmem>>, vector<1x1x128xf32>,
    } else {
    }
    return
  }
  func.func @transform_0(%arg0: i32, %arg1: i32) -> (i32, i32) {
    %c0_i32 = arith.constant 0 : i32
    return %arg0, %arg1 : i32, i32
  }
  func.func @transform_1(%arg0: i32, %arg1: i32) -> (i32, i32) {
    %c0_i32 = arith.constant 0 : i32
    return %arg0, %arg1 : i32, i32
  }
  func.func @transform_2(%arg0: i32, %arg1: i32) -> (i32, i32) {
    %c0_i32 = arith.constant 0 : i32
    %c0_i32_0 = arith.constant 0 : i32
    %c0_i32_1 = arith.constant 0 : i32
    return %c0_i32, %c0_i32_0 : i32, i32
  }
  func.func @transform_3(%arg0: i32, %arg1: i32) -> (i32, i32, i32) {
    %c1_i32 = arith.constant 1 : i32
    %0 = arith.muli %arg0, %c1_i32 : i32
    %1 = arith.addi %0, %arg1 : i32
    %c0_i32 = arith.constant 0 : i32
    %c0_i32_0 = arith.constant 0 : i32
    %c0_i32_1 = arith.constant 0 : i32
    return %1, %c0_i32, %c0_i32_0 : i32, i32, i32
  }
}

</mosaic_0001>

<bundles_post_ra>
// kernel: gauss_loss.1
= control target key start
LH: loop header
LB: loop body
LE: loop exit
PB: predicated region body
PF: predicated region fallthrough
CT: control target
= control target key end

     0   :  { %v926_v7 = vmov 1983009808   ;;  %v75_v9 = vlaneseq  ;;  %vm431_vm0 = vcmask 1041408   ;;  %s1178_s2 = inlined_call_operand.vmem [shape: bf16[256,256], index: 2, kind: input, shape index: {}]   ;;  %s1179_s0 = inlined_call_operand.vmem [shape: f32[2,256], index: 0, kind: input, shape index: {}]   ;;  %s1180_s1 = inlined_call_operand.vmem [shape: f32[2,128], index: 1, kind: input, shape index: {}]   ;;  %s1181_s3 = inlined_call_operand.vmem [shape: f32[1,1,128], index: 3, kind: output, shape index: {}]  }
   0x1   :  { %v950_v0 = vld [vmem:[%s1178_s2 + $0x74] ss:$8 sps:$4 sm:$0xff]   ;;  %v955_v1 = vld [vmem:[%s1178_s2 + $0x70] ss:$8 sps:$4 sm:$0xff]   ;;  %v962_v2 = vld [vmem:[%s1178_s2 + $0x64] ss:$8 sps:$4 sm:$0xff]   ;;  %v73_v8 = vunpack.c.l.s4 %v926_v7 }
   0x2   :  { %298 = vmatprep.subr.bf16.mxu0 %v950_v0  ;;  %339 = vmatprep.subr.bf16.mxu1 %v950_v0  ;;  %v969_v3 = vld [vmem:[%s1178_s2 + $0x60] ss:$8 sps:$4 sm:$0xff]   ;;  %v976_v4 = vld [vmem:[%s1178_s2 + $0x54] ss:$8 sps:$4 sm:$0xff]   ;;  %v983_v5 = vld [vmem:[%s1178_s2 + $0x50] ss:$8 sps:$4 sm:$0xff]  }
   0x3   :  { %299 = vmatpush1.bf16.msra.mxu0 %v955_v1  ;;  %340 = vmatpush1.bf16.msra.mxu1 %v955_v1  ;;  %v990_v6 = vld [vmem:[%s1178_s2 + $0x44] ss:$8 sps:$4 sm:$0xff]   ;;  %v997_v10 = vld [vmem:[%s1178_s2 + $0x40] ss:$8 sps:$4 sm:$0xff]   ;;  %v1004_v11 = vld [vmem:[%s1178_s2 + $0x34] ss:$8 sps:$4 sm:$0xff]   ;;  %v74_v12 = vunpack.c.0.s8 %v73_v8 }
   0x4   :  { %300 = vmatprep.subr.bf16.mxu0 %v962_v2  ;;  %341 = vmatprep.subr.bf16.mxu1 %v962_v2  ;;  %v76_v13 = vshrl.u32 %v75_v9, 7  ;;  %v1011_v14 = vld [vmem:[%s1178_s2 + $0x30] ss:$8 sps:$4 sm:$0xff]   ;;  %v1018_v15 = vld [vmem:[%s1178_s2 + $0x24] ss:$8 sps:$4 sm:$0xff]  }
   0x5   :  { %v1027_v17 = vld [vmem:[%s1178_s2 + $0x20] ss:$8 sps:$4 sm:$0xff]   ;;  %v1034_v18 = vld [vmem:[%s1178_s2 + $0x14] ss:$8 sps:$4 sm:$0xff]   ;;  %v1045_v21 = vld [vmem:[%s1178_s2 + $0x10] ss:$8 sps:$4 sm:$0xff]  }
   0x6   :  { %v1020_v16 = vsub.s32 %v74_v12, %v76_v13  ;;  %v69_v19 = vld [vmem:[%s1179_s0] sm:$0xf]  ;;  %v1052_v22 = vld [vmem:[%s1178_s2 + $0x4] ss:$8 sps:$4 sm:$0xff]   ;;  %v1069_v28 = vld [vmem:[%s1178_s2 + $0xf4] ss:$8 sps:$4 sm:$0xff]  }
   0x7   :  { %301 = vmatpush1.bf16.msra.mxu0 %v969_v3  ;;  %342 = vmatpush1.bf16.msra.mxu1 %v969_v3  ;;  %v1062_v27 = vld [vmem:[%s1178_s2] ss:$8 sps:$4 sm:$0xff]   ;;  %v1076_v31 = vld [vmem:[%s1178_s2 + $0xf0] ss:$8 sps:$4 sm:$0xff]   ;;  %v1083_v32 = vld [vmem:[%s1178_s2 + $0xe4] ss:$8 sps:$4 sm:$0xff]  }
   0x8   :  { %302 = vmatprep.subr.bf16.mxu0 %v976_v4  ;;  %343 = vmatprep.subr.bf16.mxu1 %v976_v4  ;;  %v78_v20 = vrot.slane %v69_v19, %v1020_v16  ;;  %v1091_v35 = vld [vmem:[%s1178_s2 + $0xe0] ss:$8 sps:$4 sm:$0xff]   ;;  %v1098_v36 = vld [vmem:[%s1178_s2 + $0xd4] ss:$8 sps:$4 sm:$0xff]   ;;  %v1106_v40 = vld [vmem:[%s1178_s2 + $0xd0] ss:$8 sps:$4 sm:$0xff]  }
   0x9   :  { %v1113_v41 = vld [vmem:[%s1178_s2 + $0xc4] ss:$8 sps:$4 sm:$0xff]   ;;  %v909_v45 = vld [vmem:[%s1178_s2 + $0xc0] ss:$8 sps:$4 sm:$0xff]   ;;  %v910_v46 = vld [vmem:[%s1178_s2 + $0xb4] ss:$8 sps:$4 sm:$0xff]  }
   0xa   :  { %v79_v23 = vcombine.high %v78_v20, %v78_v20  ;;  %v1054_v24 = vpack.c.bf16 %v78_v20, %v78_v20  ;;  %v912_v48 = vld [vmem:[%s1178_s2 + $0xb0] ss:$8 sps:$4 sm:$0xff]   ;;  %v913_v50 = vld [vmem:[%s1178_s2 + $0xa4] ss:$8 sps:$4 sm:$0xff]   ;;  %v915_v51 = vld [vmem:[%s1178_s2 + $0xa0] ss:$8 sps:$4 sm:$0xff]  }
   0xb   :  { %303 = vmatpush1.bf16.msra.mxu0 %v983_v5  ;;  %344 = vmatpush1.bf16.msra.mxu1 %v983_v5  ;;  %v916_v53 = vld [vmem:[%s1178_s2 + $0x94] ss:$8 sps:$4 sm:$0xff]   ;;  %v918_v54 = vld [vmem:[%s1178_s2 + $0x90] ss:$8 sps:$4 sm:$0xff]   ;;  %v919_v56 = vld [vmem:[%s1178_s2 + $0x84] ss:$8 sps:$4 sm:$0xff]  }
   0xc   :  { %304 = vmatprep.subr.bf16.mxu0 %v990_v6  ;;  %345 = vmatprep.subr.bf16.mxu1 %v990_v6  ;;  %v83_v25 = vpack.c.bf16 %v79_v23, %v79_v23  ;;  %v84_v26 = vunpack.c.l.bf16 %v1054_v24  ;;  %v921_v57 = vld [vmem:[%s1178_s2 + $0x80] ss:$8 sps:$4 sm:$0xff]  }
   0xe   :  { %v85_v29 = vunpack.c.l.bf16 %v83_v25  ;;  %371 = vmatprep.mubr.bf16.mxu1 %v83_v25 }
   0xf   :  { %305 = vmatpush1.bf16.msra.mxu0 %v997_v10  ;;  %346 = vmatpush1.bf16.msra.mxu1 %v997_v10 }
  0x10   :  { %306 = vmatprep.subr.bf16.mxu0 %v1004_v11  ;;  %347 = vmatprep.subr.bf16.mxu1 %v1004_v11  ;;  %v88_v30 = vcombine.low %v84_v26, %v85_v29 }
  0x12   :  { %v95_v33 = vrot.slane %v88_v30, %v1020_v16 }
  0x13   :  { %307 = vmatpush1.bf16.msra.mxu0 %v1011_v14  ;;  %348 = vmatpush1.bf16.msra.mxu1 %v1011_v14 }
  0x14   :  { %308 = vmatprep.subr.bf16.mxu0 %v1018_v15  ;;  %349 = vmatprep.subr.bf16.mxu1 %v1018_v15  ;;  %v97_v34 = vsub.f32 %v69_v19, %v95_v33 }
  0x16   :  { %v105_v37 = vrot.slane %v97_v34, %v1020_v16 }
  0x17   :  { %309 = vmatpush1.bf16.msra.mxu0 %v1027_v17  ;;  %350 = vmatpush1.bf16.msra.mxu1 %v1027_v17 }
  0x18   :  { %310 = vmatprep.subr.bf16.mxu0 %v1034_v18  ;;  %351 = vmatprep.subr.bf16.mxu1 %v1034_v18  ;;  %v106_v38 = vcombine.high %v105_v37, %v105_v37  ;;  %v109_v39 = vpack.c.bf16 %v105_v37, %v105_v37 }
  0x1a   :  { %v110_v42 = vpack.c.bf16 %v106_v38, %v106_v38  ;;  %v111_v43 = vunpack.c.l.bf16 %v109_v39 }
  0x1b   :  { %311 = vmatpush1.bf16.msra.mxu0 %v1045_v21  ;;  %352 = vmatpush1.bf16.msra.mxu1 %v1045_v21 }
  0x1c   :  { %312 = vmatprep.subr.bf16.mxu0 %v1052_v22  ;;  %353 = vmatprep.subr.bf16.mxu1 %v1052_v22  ;;  %v112_v44 = vunpack.c.l.bf16 %v110_v42 }
  0x1d   :  { %330 = vmatprep.mubr.bf16.mxu0 %v110_v42 }
  0x1e   :  { %v115_v47 = vcombine.low %v111_v43, %v112_v44 }
  0x1f   :  { %313 = vmatpush1.bf16.msra.mxu0 %v1062_v27  ;;  %354 = vmatpush1.bf16.msra.mxu1 %v1062_v27 }
  0x20   :  { %314 = vmatprep.subr.bf16.mxu0 %v1069_v28  ;;  %355 = vmatprep.subr.bf16.mxu1 %v1069_v28  ;;  %v122_v49 = vrot.slane %v115_v47, %v1020_v16 }
  0x22   :  { %v124_v52 = vsub.f32 %v97_v34, %v122_v49 }
  0x23   :  { %315 = vmatpush2.bf16.msra.mxu0 %v1076_v31  ;;  %356 = vmatpush2.bf16.msra.mxu1 %v1076_v31 }
  0x24   :  { %316 = vmatprep.subr.bf16.mxu0 %v1083_v32  ;;  %357 = vmatprep.subr.bf16.mxu1 %v1083_v32  ;;  %v132_v55 = vrot.slane %v124_v52, %v1020_v16 }
  0x26   :  { %v133_v58 = vcombine.high %v132_v55, %v132_v55  ;;  %v136_v60 = vpack.c.bf16 %v132_v55, %v132_v55 }
  0x27   :  { %317 = vmatpush2.bf16.msra.mxu0 %v1091_v35  ;;  %358 = vmatpush2.bf16.msra.mxu1 %v1091_v35 }
  0x28   :  { %318 = vmatprep.subr.bf16.mxu0 %v1098_v36  ;;  %359 = vmatprep.subr.bf16.mxu1 %v1098_v36  ;;  %v137_v59 = vpack.c.bf16 %v133_v58, %v133_v58 }
  0x2b   :  { %319 = vmatpush2.bf16.msra.mxu0 %v1106_v40  ;;  %360 = vmatpush2.bf16.msra.mxu1 %v1106_v40 }
  0x2c   :  { %320 = vmatprep.subr.bf16.mxu0 %v1113_v41  ;;  %361 = vmatprep.subr.bf16.mxu1 %v1113_v41 }
  0x2f   :  { %321 = vmatpush2.bf16.msra.mxu0 %v909_v45  ;;  %362 = vmatpush2.bf16.msra.mxu1 %v909_v45 }
  0x30   :  { %322 = vmatprep.subr.bf16.mxu0 %v910_v46  ;;  %363 = vmatprep.subr.bf16.mxu1 %v910_v46 }
  0x33   :  { %323 = vmatpush2.bf16.msra.mxu0 %v912_v48  ;;  %364 = vmatpush2.bf16.msra.mxu1 %v912_v48 }
  0x34   :  { %324 = vmatprep.subr.bf16.mxu0 %v913_v50  ;;  %365 = vmatprep.subr.bf16.mxu1 %v913_v50 }
  0x37   :  { %325 = vmatpush2.bf16.msra.mxu0 %v915_v51  ;;  %366 = vmatpush2.bf16.msra.mxu1 %v915_v51 }
  0x38   :  { %326 = vmatprep.subr.bf16.mxu0 %v916_v53  ;;  %367 = vmatprep.subr.bf16.mxu1 %v916_v53 }
  0x3b   :  { %327 = vmatpush2.bf16.msra.mxu0 %v918_v54  ;;  %368 = vmatpush2.bf16.msra.mxu1 %v918_v54 }
  0x3c   :  { %328 = vmatprep.subr.bf16.mxu0 %v919_v56  ;;  %369 = vmatprep.subr.bf16.mxu1 %v919_v56 }
  0x3f   :  { %329 = vmatpush2.bf16.msra.mxu0 %v921_v57  ;;  %370 = vmatpush2.bf16.msra.mxu1 %v921_v57 }
  0x40   :  { %380 = vmatprep.subr.bf16.mxu0 %v950_v0 }
  0x42   :  { %331 = vmatmul.mubr.bf16.vlgmr.msra.gmra.mxu0 %v109_v39  ;;  %372 = vmatmul.mubr.bf16.vlgmr.msra.gmra.mxu1 %v1054_v24 }
  0x43   :  { %381 = vmatpush1.bf16.msra.mxu0 %v955_v1  ;;  %412 = vmatprep.mubr.bf16.mxu0 %v137_v59 }
  0x44   :  { %382 = vmatprep.subr.bf16.mxu0 %v962_v2 }
  0x47   :  { %383 = vmatpush1.bf16.msra.mxu0 %v969_v3 }
  0x48   :  { %384 = vmatprep.subr.bf16.mxu0 %v976_v4 }
  0x4b   :  { %385 = vmatpush1.bf16.msra.mxu0 %v983_v5 }
  0x4c   :  { %386 = vmatprep.subr.bf16.mxu0 %v990_v6 }
  0x4f   :  { %387 = vmatpush1.bf16.msra.mxu0 %v997_v10 }
  0x50   :  { %388 = vmatprep.subr.bf16.mxu0 %v1004_v11 }
  0x53   :  { %389 = vmatpush1.bf16.msra.mxu0 %v1011_v14  ;;  %v70_v14 = vld [vmem:[%s1180_s1] sm:$0x3] }
  0x54   :  { %390 = vmatprep.subr.bf16.mxu0 %v1018_v15 }
  0x57   :  { %391 = vmatpush1.bf16.msra.mxu0 %v1027_v17 }
  0x58   :  { %392 = vmatprep.subr.bf16.mxu0 %v1034_v18 }
  0x5b   :  { %393 = vmatpush1.bf16.msra.mxu0 %v1045_v21 }
  0x5c   :  { %394 = vmatprep.subr.bf16.mxu0 %v1052_v22 }
  0x5f   :  { %395 = vmatpush1.bf16.msra.mxu0 %v1062_v27 }
  0x60   :  { %396 = vmatprep.subr.bf16.mxu0 %v1069_v28 }
  0x63   :  { %397 = vmatpush2.bf16.msra.mxu0 %v1076_v31 }
  0x64   :  { %398 = vmatprep.subr.bf16.mxu0 %v1083_v32 }
  0x67   :  { %399 = vmatpush2.bf16.msra.mxu0 %v1091_v35 }
  0x68   :  { %400 = vmatprep.subr.bf16.mxu0 %v1098_v36 }
  0x6b   :  { %401 = vmatpush2.bf16.msra.mxu0 %v1106_v40 }
  0x6c   :  { %402 = vmatprep.subr.bf16.mxu0 %v1113_v41 }
  0x6f   :  { %403 = vmatpush2.bf16.msra.mxu0 %v909_v45 }
  0x70   :  { %404 = vmatprep.subr.bf16.mxu0 %v910_v46 }
  0x73   :  { %405 = vmatpush2.bf16.msra.mxu0 %v912_v48 }
  0x74   :  { %406 = vmatprep.subr.bf16.mxu0 %v913_v50 }
  0x77   :  { %407 = vmatpush2.bf16.msra.mxu0 %v915_v51 }
  0x78   :  { %408 = vmatprep.subr.bf16.mxu0 %v916_v53 }
  0x7b   :  { %409 = vmatpush2.bf16.msra.mxu0 %v918_v54 }
  0x7c   :  { %410 = vmatprep.subr.bf16.mxu0 %v919_v56 }
  0x7f   :  { %411 = vmatpush2.bf16.msra.mxu0 %v921_v57 }
  0x82   :  { %413 = vmatmul.mubr.bf16.vlgmr.msra.gmra.mxu0 %v136_v60 }
 0x102   :  { %v332_v61 = vpop.f32.mrf.mxu0  ;;  %v373_v62 = vpop.f32.mrf.mxu1 }
 0x103   :  { %v374_v63 = vadd.f32 %v373_v62, %v332_v61 }
 0x104   :  { %v334_v0 = vpop.f32.mrf.mxu0  ;;  %v375_v1 = vpop.f32.mrf.mxu1 }
 0x105   :  { %v376_v7 = vadd.f32 %v375_v1, %v334_v0 }
 0x106   :  { %v336_v2 = vpop.f32.mrf.mxu0  ;;  %v377_v3 = vpop.f32.mrf.mxu1 }
 0x108   :  { %v337_v4 = vpop.f32.mrf.mxu0  ;;  %v378_v5 = vpop.f32.mrf.mxu1 }
 0x142   :  { %v414_v6 = vpop.f32.mrf.mxu0 }
 0x143   :  { %v421_v13 = vadd.f32 %v414_v6, %v374_v63 }
 0x144   :  { %v416_v8 = vpop.f32.mrf.mxu0 }
 0x145   :  { %v422_v9 = vadd.f32 %v416_v8, %v376_v7  ;;  %v424_v15 = vsub.f32 %v70_v14, %v421_v13 }
 0x146   :  { %v418_v10 = vpop.f32.mrf.mxu0 }
 0x147   :  { %v423_v11 = vmul.f32 %v422_v9, %v422_v9  ;;  %v425_v16 = vmul.f32 %v424_v15, %v424_v15 }
 0x148   :  { %v419_v12 = vpop.f32.mrf.mxu0 }
 0x149   :  { %922 = vrcp.f32 %v423_v11 }
 0x14a   :  { %924 = vlog2.f32 %v423_v11 }
 0x156   :  { %v923_v17 = vpop.eup %922 }
 0x157   :  { %v925_v18 = vpop.eup %924  ;;  %v427_v19 = vmul.f32 %v923_v17, %v425_v16 }
 0x158   :  { %v429_v20 = vmul.f32 0.6931472, %v925_v18 }
 0x15a   :  { %v430_v21 = vadd.f32 %v429_v20, %v427_v19 }
 0x15c   :  { %v432_v22 = vsel %vm431_vm0, %v430_v21, 0.0 }
 0x15d   :  { %v433_v23 = vrot.slane %v432_v22, 4 }
 0x15f   :  { %v434_v24 = vadd.f32 %v433_v23, %v432_v22 }
 0x161   :  { %v435_v25 = vrot.slane %v434_v24, 2 }
 0x163   :  { %v436_v26 = vadd.f32 %v435_v25, %v434_v24 }
 0x165   :  { %v437_v27 = vrot.slane %v436_v26, 1 }
 0x167   :  { %v438_v28 = vadd.f32 %v437_v27, %v436_v26 }
 0x169   :  { %440 = vst [vmem:[%s1181_s3] sm:$0x1] %v438_v28 }

</bundles_post_ra>
